<compile_context>
chip_gen: v7x
topology: tpu7x:2x2x1
jax: 0.10.0
libtpu: 0.0.40
codegen_flags: <defaults>
</compile_context>

<pallas_src>
import functools

import jax
import jax.numpy as jnp
import numpy as np
from jax.experimental import pallas as pl
from jax.experimental.pallas import tpu as pltpu

LANE = 128
ROW = 16  # batch-row granularity: multiple of 8 (f32 in) and 16 (bf16 out)


def _round_up(n, m):
    return ((n + m - 1) // m) * m


# --------------------------------------------------------------------------- #
# Kernel
# --------------------------------------------------------------------------- #
def _qnet_kernel(xn_ref, xc_ref, w1f_ref, colmap_ref, coloff_ref, b1_ref,
                 w2_ref, b2_ref, w3_ref, b3_ref, out_ref,
                 *, num_fts, num_pad, c_pad):
    tb = xn_ref.shape[0]

    # ---- multi-hot over all category rows, built in one shot ----------------
    # targets[b, j] = idx[b, cat(j)] + row_offset(cat(j));  coloff = -1 on
    # padding columns so they never match the column iota.
    xc = xc_ref[...].astype(jnp.float32)                         # (TB, num_cats)
    tgt = jnp.dot(xc, colmap_ref[...],
                  preferred_element_type=jnp.float32) + coloff_ref[...]
    col_ids = jax.lax.broadcasted_iota(jnp.int32, (tb, c_pad), 1)
    mh = (col_ids == tgt.astype(jnp.int32)).astype(jnp.bfloat16)  # (TB, c_pad)

    # ---- fused layer 1: a single K = num_pad + c_pad MXU pass ---------------
    xn = xn_ref[...]                                              # (TB, num_fts)
    if num_pad > num_fts:
        xn = jnp.concatenate(
            [xn, jnp.zeros((tb, num_pad - num_fts), jnp.float32)], axis=-1)
    act = jnp.concatenate([xn.astype(jnp.bfloat16), mh], axis=-1)  # (TB, K1)

    h1 = jnp.dot(act, w1f_ref[...], preferred_element_type=jnp.float32)
    # F.dropout(p=0.25, training=False) == identity
    h1 = jnp.maximum(h1 + b1_ref[...], 0.0)

    # ---- layer 2 -------------------------------------------------------------
    h2 = jnp.dot(h1.astype(jnp.bfloat16), w2_ref[...],
                 preferred_element_type=jnp.float32) + b2_ref[...]
    h2 = jnp.maximum(h2, 0.0)

    # ---- layer 3 (lin3gauss, no activation) ----------------------------------
    out = jnp.dot(h2.astype(jnp.bfloat16), w3_ref[...],
                  preferred_element_type=jnp.float32) + b3_ref[...]
    out_ref[...] = out.astype(out_ref.dtype)


def _resident_spec(a):
    """Grid-invariant block: VMEM-resident, single-buffered (pure VMEM savings)."""
    idx = lambda i: (0,) * a.ndim
    try:
        return pl.BlockSpec(a.shape, idx, pipeline_mode=pl.Buffered(1))
    except (TypeError, AttributeError):   # pipeline_mode unsupported -> default
        return pl.BlockSpec(a.shape, idx)


def qnet_mlp_pallas(x_num, x_cat, w, *, tile_b, static, vmem_limit_bytes):
    bp = x_num.shape[0]
    z_pad = w["w3"].shape[1]
    grid = (bp // tile_b,)

    kernel = functools.partial(
        _qnet_kernel, num_fts=static["num_fts"], num_pad=static["num_pad"],
        c_pad=static["c_pad"])

    return pl.pallas_call(
        kernel,
        out_shape=jax.ShapeDtypeStruct((bp, z_pad), jnp.bfloat16),
        grid=grid,
        in_specs=[
            pl.BlockSpec((tile_b, x_num.shape[1]), lambda i: (i, 0)),  # batch-tiled
            pl.BlockSpec((tile_b, x_cat.shape[1]), lambda i: (i, 0)),  # batch-tiled
            _resident_spec(w["w1f"]), _resident_spec(w["colmap"]),
            _resident_spec(w["coloff"]), _resident_spec(w["b1"]),
            _resident_spec(w["w2"]), _resident_spec(w["b2"]),
            _resident_spec(w["w3"]), _resident_spec(w["b3"]),
        ],
        out_specs=pl.BlockSpec((tile_b, z_pad), lambda i: (i, 0)),
        compiler_params=pltpu.CompilerParams(
            dimension_semantics=("parallel",),
            vmem_limit_bytes=vmem_limit_bytes),
    )(x_num, x_cat, w["w1f"], w["colmap"], w["coloff"], w["b1"],
      w["w2"], w["b2"], w["w3"], w["b3"])


# --------------------------------------------------------------------------- #
# Parameter preparation (padding + embedding fold) and forward wrapper
# --------------------------------------------------------------------------- #
def prepare_qnet_params(params, num_fts):
    """Pad weights lane-dense, fold embeddings through W1, and build the
    column->category maps used for the one-shot multi-hot."""
    embed_tables = params["embeddings"]
    num_cats = len(embed_tables)
    embed_dims = [int(t.shape[1]) for t in embed_tables]
    E = sum(embed_dims)
    N = int(params["w2"].shape[0])
    z_dim = int(params["w3"].shape[1])

    # v6e note: for production widths (N >= 128) rounding n_pad to 256 fills the
    # 2x256^2 MXU per pass; 128 is kept here since the reference width is tiny.
    n_pad = _round_up(N, LANE)
    z_pad = _round_up(z_dim, LANE)
    num_pad = _round_up(max(num_fts, 1), LANE)
    total_cats = sum(int(t.shape[0]) for t in embed_tables)
    c_pad = _round_up(total_cats, LANE)
    k1 = num_pad + c_pad

    w1 = params["w1"]                 # (E + num_fts, N): [emb rows | numeric rows]
    w1_emb, w1_num = w1[:E], w1[E:]

    # Fold each embedding table through its slice of W1 (f32); record offsets.
    folded_blocks, cat_offsets = [], []
    row, col = 0, 0
    for t in embed_tables:
        d = int(t.shape[1])
        folded_blocks.append(t @ w1_emb[col:col + d])
        cat_offsets.append(row)
        row += int(t.shape[0])
        col += d
    folded = jnp.concatenate(folded_blocks, axis=0)          # (total_cats, N)

    bf = jnp.bfloat16
    # Fused layer-1 weight: rows [0:num_fts] = numeric W1 rows,
    # rows [num_pad : num_pad+total_cats] = folded embedding rows, rest zero.
    w1f = jnp.zeros((k1, n_pad), bf)
    w1f = w1f.at[:num_fts, :N].set(w1_num.astype(bf))
    w1f = w1f.at[num_pad:num_pad + total_cats, :N].set(folded.astype(bf))

    # colmap[i, j] = 1 iff multi-hot column j belongs to category i;
    # coloff[0, j] = that category's row offset (-1 on padding columns).
    colmap_np = np.zeros((num_cats, c_pad), np.float32)
    coloff_np = np.full((1, c_pad), -1.0, np.float32)
    for i, (off, t) in enumerate(zip(cat_offsets, embed_tables)):
        n_i = int(t.shape[0])
        colmap_np[i, off:off + n_i] = 1.0
        coloff_np[0, off:off + n_i] = float(off)

    w2_p = jnp.zeros((n_pad, n_pad), bf).at[:N, :N].set(params["w2"].astype(bf))
    w3_p = jnp.zeros((n_pad, z_pad), bf).at[:N, :z_dim].set(params["w3"].astype(bf))
    b1_p = jnp.zeros((1, n_pad), jnp.float32).at[:, :N].set(params["b1"])
    b2_p = jnp.zeros((1, n_pad), jnp.float32).at[:, :N].set(params["b2"])
    b3_p = jnp.zeros((1, z_pad), jnp.float32).at[:, :z_dim].set(params["b3"])

    weights = {"w1f": w1f, "colmap": jnp.asarray(colmap_np),
               "coloff": jnp.asarray(coloff_np),
               "b1": b1_p, "w2": w2_p, "b2": b2_p, "w3": w3_p, "b3": b3_p}
    static = dict(num_fts=num_fts, num_cats=num_cats, num_pad=num_pad,
                  c_pad=c_pad, n_pad=n_pad, z_pad=z_pad, z_dim=z_dim)
    return weights, static


def qnet_forward(x, weights, *, static, tile_b=512):
    """Full Q_net.forward (eval mode), fused into a single Pallas kernel."""
    B = x.shape[0]
    num_fts = static["num_fts"]
    num_cats = static["num_cats"]
    z_dim, z_pad = static["z_dim"], static["z_pad"]

    # Split x into numeric f32 + int32 categorical index columns — no lane
    # padding in HBM; only the batch dim is padded to the tile size.
    x_num = x[:, :num_fts].astype(jnp.float32)
    x_cat = x[:, num_fts:num_fts + num_cats].astype(jnp.int32)

    # Batch tiling: >= 2 grid steps when possible (v7x: 2 TensorCores),
    # without over-padding small batches.
    b_r = _round_up(B, ROW)
    tb = min(tile_b, _round_up((b_r + 1) // 2, ROW)) if b_r >= 2 * ROW else b_r
    bp = _round_up(b_r, tb)

    if bp > B:
        pad = bp - B
        x_num = jnp.concatenate(
            [x_num, jnp.zeros((pad, num_fts), jnp.float32)], axis=0)
        x_cat = jnp.concatenate(
            [x_cat, jnp.zeros((pad, num_cats), jnp.int32)], axis=0)
    # NOTE: padded batch rows produce garbage (index 0 hits real folded rows);
    # they are sliced away below and must never be consumed unsliced.

    # VMEM budget: single-buffered resident weights + double-buffered I/O tiles
    # + in-kernel intermediates + headroom; capped at v7x's 64 MiB physical.
    k1 = static["num_pad"] + static["c_pad"]
    n_pad = static["n_pad"]
    weight_bytes = sum(int(a.size) * a.dtype.itemsize for a in weights.values())
    stream_bytes = 2 * tb * ((num_fts + num_cats) * 4 + z_pad * 2)
    scratch_bytes = tb * (2 * k1 + 4 * static["c_pad"] + 8 * n_pad + 4 * z_pad)
    vmem_limit = int(min(64 << 20,
                         max(32 << 20,
                             weight_bytes + stream_bytes + scratch_bytes
                             + (8 << 20))))

    out = qnet_mlp_pallas(x_num, x_cat, weights, tile_b=tb, static=static,
                          vmem_limit_bytes=vmem_limit)
    return out[:B, :z_dim].astype(jnp.float32)


# --------------------------------------------------------------------------- #
# Reference (pure JAX, f32) and synthetic parameters
# --------------------------------------------------------------------------- #
def qnet_reference(x, params, num_fts):
    embed_tables = params["embeddings"]
    embed_list = []
    for i, table in enumerate(embed_tables):
        idx = x[:, num_fts + i].astype(jnp.int32)
        embed_list.append(jnp.take(table, idx, axis=0))
    inputs = jnp.concatenate(
        [jnp.concatenate(embed_list, axis=1).astype(jnp.float32),
         x[:, :num_fts].astype(jnp.float32)], axis=1)
    h1 = jnp.maximum(inputs @ params["w1"] + params["b1"], 0.0)
    h2 = jnp.maximum(h1 @ params["w2"] + params["b2"], 0.0)
    return h2 @ params["w3"] + params["b3"]


def init_params(key, num_fts, embed_specs, N, z_dim):
    """Deterministic synthetic parameters (shapes match nn.Linear / nn.Embedding)."""
    keys = jax.random.split(key, 8)
    embed_dims = [d for (_, d) in embed_specs]
    input_dim = num_fts + sum(embed_dims)

    def linear(kw, kb, fan_in, fan_out):
        bound = 1.0 / jnp.sqrt(fan_in)
        w = jax.random.uniform(kw, (fan_in, fan_out), jnp.float32, -bound, bound)
        b = jax.random.uniform(kb, (1, fan_out), jnp.float32, -bound, bound)
        return w, b

    w1, b1 = linear(keys[0], keys[1], input_dim, N)
    w2, b2 = linear(keys[2], keys[3], N, N)
    w3, b3 = linear(keys[4], keys[5], N, z_dim)

    emb_keys = jax.random.split(keys[6], len(embed_specs))
    embeddings = [
        jax.random.normal(k, (ncat, dim), jnp.float32)
        for k, (ncat, dim) in zip(emb_keys, embed_specs)
    ]
    return {
        "w1": w1, "b1": b1, "w2": w2, "b2": b2, "w3": w3, "b3": b3,
        "embeddings": embeddings,
    }, input_dim


if __name__ == "__main__":
    key = jax.random.PRNGKey(0)

    # Small shapes consistent with the module:
    B = 8            # batch
    num_fts = 4      # numeric features
    embed_specs = [(5, 3), (7, 2)]   # (num_categories, embedding_dim)
    N = 32           # hidden width
    z_dim = 8        # latent dim

    kp, kx, kc0, kc1 = jax.random.split(key, 4)
    params, input_dim = init_params(kp, num_fts, embed_specs, N, z_dim)
    weights, static = prepare_qnet_params(params, num_fts)

    # x: numeric features followed by categorical index columns (as floats,
    # matching the PyTorch module's single float input with .long() indices).
    x_num = jax.random.normal(kx, (B, num_fts), jnp.float32)
    c0 = jax.random.randint(kc0, (B, 1), 0, embed_specs[0][0]).astype(jnp.float32)
    c1 = jax.random.randint(kc1, (B, 1), 0, embed_specs[1][0]).astype(jnp.float32)
    x = jnp.concatenate([x_num, c0, c1], axis=1)   # (B, num_fts + num_cats)

    fwd = jax.jit(functools.partial(qnet_forward, static=static, tile_b=512))
    out = jax.block_until_ready(fwd(x, weights))

    assert out.shape == (B, z_dim), out.shape
    assert bool(jnp.all(jnp.isfinite(out)))

    # Numerical check vs the pure-JAX f32 reference (bf16 matmul/out tolerance).
    ref = qnet_reference(x, params, num_fts)
    max_err = float(jnp.max(jnp.abs(out - ref)))
    assert jnp.allclose(out, ref, atol=5e-2, rtol=5e-2), max_err

    print("KERNEL_OK")
</pallas_src>

<mosaic_0001>
module attributes {stable_mosaic.version = 11 : i64} {
  func.func @_qnet_kernel(%arg0: i32, %arg1: memref<16x4xf32, #tpu.memory_space<vmem>>, %arg2: memref<16x2xi32, #tpu.memory_space<vmem>>, %arg3: memref<256x128xbf16, #tpu.memory_space<vmem>>, %arg4: memref<2x128xf32, #tpu.memory_space<vmem>>, %arg5: memref<1x128xf32, #tpu.memory_space<vmem>>, %arg6: memref<1x128xf32, #tpu.memory_space<vmem>>, %arg7: memref<128x128xbf16, #tpu.memory_space<vmem>>, %arg8: memref<1x128xf32, #tpu.memory_space<vmem>>, %arg9: memref<128x128xbf16, #tpu.memory_space<vmem>>, %arg10: memref<1x128xf32, #tpu.memory_space<vmem>>, %arg11: memref<16x128xbf16, #tpu.memory_space<vmem>>) attributes {dimension_semantics = [#tpu.dimension_semantics<parallel>], iteration_bounds = array<i64: 1>, scalar_prefetch = 0 : i64, scratch_operands = 0 : i64, tpu.core_type = #tpu.core_type<tc>, window_params = [{transform_indices = @transform_0, window_bounds = array<i64: 16, 4>}, {transform_indices = @transform_1, window_bounds = array<i64: 16, 2>}, {pipeline_mode = #tpu.pipeline_mode<synchronous>, transform_indices = @transform_2, window_bounds = array<i64: 256, 128>}, {pipeline_mode = #tpu.pipeline_mode<synchronous>, transform_indices = @transform_3, window_bounds = array<i64: 2, 128>}, {pipeline_mode = #tpu.pipeline_mode<synchronous>, transform_indices = @transform_4, window_bounds = array<i64: 1, 128>}, {pipeline_mode = #tpu.pipeline_mode<synchronous>, transform_indices = @transform_5, window_bounds = array<i64: 1, 128>}, {pipeline_mode = #tpu.pipeline_mode<synchronous>, transform_indices = @transform_6, window_bounds = array<i64: 128, 128>}, {pipeline_mode = #tpu.pipeline_mode<synchronous>, transform_indices = @transform_7, window_bounds = array<i64: 1, 128>}, {pipeline_mode = #tpu.pipeline_mode<synchronous>, transform_indices = @transform_8, window_bounds = array<i64: 128, 128>}, {pipeline_mode = #tpu.pipeline_mode<synchronous>, transform_indices = @transform_9, window_bounds = array<i64: 1, 128>}, {transform_indices = @transform_10, window_bounds = array<i64: 16, 128>}]} {
    %c0 = arith.constant 0 : index
    %c0_0 = arith.constant 0 : index
    %0 = vector.load %arg2[%c0, %c0_0] : memref<16x2xi32, #tpu.memory_space<vmem>>, vector<16x2xi32>
    %1 = arith.sitofp %0 : vector<16x2xi32> to vector<16x2xf32>
    %c0_1 = arith.constant 0 : index
    %c0_2 = arith.constant 0 : index
    %2 = vector.load %arg4[%c0_1, %c0_2] : memref<2x128xf32, #tpu.memory_space<vmem>>, vector<2x128xf32>
    %cst = arith.constant dense<0.000000e+00> : vector<16x128xf32>
    %3 = tpu.matmul %1, %2, %cst {dimension_numbers = #tpu.dot_dimension_numbers<[1], [0], [0], [1], [0, 0, 1, 1], [], []>} : vector<16x2xf32>, vector<2x128xf32>, vector<16x128xf32> -> vector<16x128xf32>
    %c0_3 = arith.constant 0 : index
    %c0_4 = arith.constant 0 : index
    %4 = vector.load %arg5[%c0_3, %c0_4] : memref<1x128xf32, #tpu.memory_space<vmem>>, vector<1x128xf32>
    %5 = vector.broadcast %4 : vector<1x128xf32> to vector<16x128xf32>
    %6 = arith.addf %3, %5 : vector<16x128xf32>
    %7 = tpu.iota {dimensions = array<i32: 1>} : vector<16x128xi32>
    %8 = arith.fptosi %6 : vector<16x128xf32> to vector<16x128xi32>
    %9 = arith.cmpi eq, %7, %8 : vector<16x128xi32>
    %10 = arith.extui %9 : vector<16x128xi1> to vector<16x128xi32>
    %11 = arith.sitofp %10 : vector<16x128xi32> to vector<16x128xf32>
    %12 = arith.truncf %11 : vector<16x128xf32> to vector<16x128xbf16>
    %c0_5 = arith.constant 0 : index
    %c0_6 = arith.constant 0 : index
    %13 = vector.load %arg1[%c0_5, %c0_6] : memref<16x4xf32, #tpu.memory_space<vmem>>, vector<16x4xf32>
    %cst_7 = arith.constant 0.000000e+00 : f32
    %14 = vector.broadcast %cst_7 : f32 to vector<16x124xf32>
    %15 = tpu.concatenate %13, %14 in 1 : vector<16x4xf32>, vector<16x124xf32> -> vector<16x128xf32>
    %16 = arith.truncf %15 : vector<16x128xf32> to vector<16x128xbf16>
    %17 = tpu.concatenate %16, %12 in 1 : vector<16x128xbf16>, vector<16x128xbf16> -> vector<16x256xbf16>
    %c0_8 = arith.constant 0 : index
    %c0_9 = arith.constant 0 : index
    %18 = vector.load %arg3[%c0_8, %c0_9] : memref<256x128xbf16, #tpu.memory_space<vmem>>, vector<256x128xbf16>
    %cst_10 = arith.constant dense<0.000000e+00> : vector<16x128xf32>
    %19 = tpu.matmul %17, %18, %cst_10 {dimension_numbers = #tpu.dot_dimension_numbers<[1], [0], [0], [1], [0, 0, 1, 1], [], []>} : vector<16x256xbf16>, vector<256x128xbf16>, vector<16x128xf32> -> vector<16x128xf32>
    %c0_11 = arith.constant 0 : index
    %c0_12 = arith.constant 0 : index
    %20 = vector.load %arg6[%c0_11, %c0_12] : memref<1x128xf32, #tpu.memory_space<vmem>>, vector<1x128xf32>
    %21 = vector.broadcast %20 : vector<1x128xf32> to vector<16x128xf32>
    %22 = arith.addf %19, %21 : vector<16x128xf32>
    %cst_13 = arith.constant 0.000000e+00 : f32
    %23 = vector.broadcast %cst_13 : f32 to vector<16x128xf32>
    %24 = arith.maximumf %22, %23 : vector<16x128xf32>
    %25 = arith.truncf %24 : vector<16x128xf32> to vector<16x128xbf16>
    %c0_14 = arith.constant 0 : index
    %c0_15 = arith.constant 0 : index
    %26 = vector.load %arg7[%c0_14, %c0_15] : memref<128x128xbf16, #tpu.memory_space<vmem>>, vector<128x128xbf16>
    %cst_16 = arith.constant dense<0.000000e+00> : vector<16x128xf32>
    %27 = tpu.matmul %25, %26, %cst_16 {dimension_numbers = #tpu.dot_dimension_numbers<[1], [0], [0], [1], [0, 0, 1, 1], [], []>} : vector<16x128xbf16>, vector<128x128xbf16>, vector<16x128xf32> -> vector<16x128xf32>
    %c0_17 = arith.constant 0 : index
    %c0_18 = arith.constant 0 : index
    %28 = vector.load %arg8[%c0_17, %c0_18] : memref<1x128xf32, #tpu.memory_space<vmem>>, vector<1x128xf32>
    %29 = vector.broadcast %28 : vector<1x128xf32> to vector<16x128xf32>
    %30 = arith.addf %27, %29 : vector<16x128xf32>
    %cst_19 = arith.constant 0.000000e+00 : f32
    %31 = vector.broadcast %cst_19 : f32 to vector<16x128xf32>
    %32 = arith.maximumf %30, %31 : vector<16x128xf32>
    %33 = arith.truncf %32 : vector<16x128xf32> to vector<16x128xbf16>
    %c0_20 = arith.constant 0 : index
    %c0_21 = arith.constant 0 : index
    %34 = vector.load %arg9[%c0_20, %c0_21] : memref<128x128xbf16, #tpu.memory_space<vmem>>, vector<128x128xbf16>
    %cst_22 = arith.constant dense<0.000000e+00> : vector<16x128xf32>
    %35 = tpu.matmul %33, %34, %cst_22 {dimension_numbers = #tpu.dot_dimension_numbers<[1], [0], [0], [1], [0, 0, 1, 1], [], []>} : vector<16x128xbf16>, vector<128x128xbf16>, vector<16x128xf32> -> vector<16x128xf32>
    %c0_23 = arith.constant 0 : index
    %c0_24 = arith.constant 0 : index
    %36 = vector.load %arg10[%c0_23, %c0_24] : memref<1x128xf32, #tpu.memory_space<vmem>>, vector<1x128xf32>
    %37 = vector.broadcast %36 : vector<1x128xf32> to vector<16x128xf32>
    %38 = arith.addf %35, %37 : vector<16x128xf32>
    %39 = arith.truncf %38 : vector<16x128xf32> to vector<16x128xbf16>
    %c0_25 = arith.constant 0 : index
    %c0_26 = arith.constant 0 : index
    %40 = vector.load %arg11[%c0_25, %c0_26] : memref<16x128xbf16, #tpu.memory_space<vmem>>, vector<16x128xbf16>
    tpu.vector_store %arg11[%c0_25, %c0_26], %39 {strides = array<i32>} : memref<16x128xbf16, #tpu.memory_space<vmem>>, vector<16x128xbf16>,
    return
  }
  func.func @transform_0(%arg0: i32) -> (i32, i32) {
    %c0_i32 = arith.constant 0 : i32
    %c0_i32_0 = arith.constant 0 : i32
    return %arg0, %c0_i32 : i32, i32
  }
  func.func @transform_1(%arg0: i32) -> (i32, i32) {
    %c0_i32 = arith.constant 0 : i32
    %c0_i32_0 = arith.constant 0 : i32
    return %arg0, %c0_i32 : i32, i32
  }
  func.func @transform_2(%arg0: i32) -> (i32, i32) {
    %c0_i32 = arith.constant 0 : i32
    %c0_i32_0 = arith.constant 0 : i32
    %c0_i32_1 = arith.constant 0 : i32
    return %c0_i32, %c0_i32_0 : i32, i32
  }
  func.func @transform_3(%arg0: i32) -> (i32, i32) {
    %c0_i32 = arith.constant 0 : i32
    %c0_i32_0 = arith.constant 0 : i32
    %c0_i32_1 = arith.constant 0 : i32
    return %c0_i32, %c0_i32_0 : i32, i32
  }
  func.func @transform_4(%arg0: i32) -> (i32, i32) {
    %c0_i32 = arith.constant 0 : i32
    %c0_i32_0 = arith.constant 0 : i32
    %c0_i32_1 = arith.constant 0 : i32
    return %c0_i32, %c0_i32_0 : i32, i32
  }
  func.func @transform_5(%arg0: i32) -> (i32, i32) {
    %c0_i32 = arith.constant 0 : i32
    %c0_i32_0 = arith.constant 0 : i32
    %c0_i32_1 = arith.constant 0 : i32
    return %c0_i32, %c0_i32_0 : i32, i32
  }
  func.func @transform_6(%arg0: i32) -> (i32, i32) {
    %c0_i32 = arith.constant 0 : i32
    %c0_i32_0 = arith.constant 0 : i32
    %c0_i32_1 = arith.constant 0 : i32
    return %c0_i32, %c0_i32_0 : i32, i32
  }
  func.func @transform_7(%arg0: i32) -> (i32, i32) {
    %c0_i32 = arith.constant 0 : i32
    %c0_i32_0 = arith.constant 0 : i32
    %c0_i32_1 = arith.constant 0 : i32
    return %c0_i32, %c0_i32_0 : i32, i32
  }
  func.func @transform_8(%arg0: i32) -> (i32, i32) {
    %c0_i32 = arith.constant 0 : i32
    %c0_i32_0 = arith.constant 0 : i32
    %c0_i32_1 = arith.constant 0 : i32
    return %c0_i32, %c0_i32_0 : i32, i32
  }
  func.func @transform_9(%arg0: i32) -> (i32, i32) {
    %c0_i32 = arith.constant 0 : i32
    %c0_i32_0 = arith.constant 0 : i32
    %c0_i32_1 = arith.constant 0 : i32
    return %c0_i32, %c0_i32_0 : i32, i32
  }
  func.func @transform_10(%arg0: i32) -> (i32, i32) {
    %c0_i32 = arith.constant 0 : i32
    %c0_i32_0 = arith.constant 0 : i32
    return %arg0, %c0_i32 : i32, i32
  }
}

</mosaic_0001>

<bundles_post_ra>
// kernel: qnet_forward.1
= control target key start
LH: loop header
LB: loop body
LE: loop exit
PB: predicated region body
PF: predicated region fallthrough
CT: control target
= control target key end

     0   :  { %15 = vsyncpa [#allocation3], 0  ;;  %s993_s0 = inlined_call_operand.vmem [shape: f32[16,4], index: 0, kind: input, shape index: {}]   ;;  %s994_s1 = inlined_call_operand.vmem [shape: s32[16,2], index: 1, kind: input, shape index: {}]   ;;  %s995_s2 = inlined_call_operand.hbm [shape: bf16[256,128], index: 2, kind: input, shape index: {}]   ;;  %s996_s3 = inlined_call_operand.vmem [shape: f32[2,128], index: 3, kind: input, shape index: {}]   ;;  %s997_s4 = inlined_call_operand.vmem [shape: f32[1,128], index: 4, kind: input, shape index: {}]   ;;  %s998_s5 = inlined_call_operand.vmem [shape: f32[1,128], index: 5, kind: input, shape index: {}]   ;;  %s999_s6 = inlined_call_operand.vmem [shape: bf16[128,128], index: 6, kind: input, shape index: {}]   ;;  %s1000_s7 = inlined_call_operand.vmem [shape: f32[1,128], index: 7, kind: input, shape index: {}]   ;;  %s1001_s8 = inlined_call_operand.hbm [shape: bf16[128,128], index: 8, kind: input, shape index: {}]   ;;  %s1002_s9 = inlined_call_operand.vmem [shape: f32[1,128], index: 9, kind: input, shape index: {}]   ;;  %s1003_s10 = inlined_call_operand.vmem [shape: bf16[16,128], index: 10, kind: output, shape index: {}]  }
   0x1   :  { %16 = vsyncpa [#allocation5], 0  ;;  %s835_s13 = smov [#allocation2]   ;;  %s787_s17 = scalar_lea.hbm %s995_s2, 2048 }
   0x2   :  { %s26_s14 = sshll.u32 %s835_s13, 4  ;;  %p788_p0 = scmp.ne.s32.totalorder %s995_s2, %s787_s17  ;;  %s27_s14 = int_to_ptr.vmem [resolvable:$true] %s26_s14 }
   0x3   :  { %p791_p1 = scmp.lt.u32.totalorder %s787_s17, %s995_s2 }
   0x5   :  { %p793_p2 = pnand %p791_p1, %p788_p0 }
   0x7   :  { %796 = shalt.err (!%p793_p2)
}
   0x8   :  { %s797_s22 = scalar_lea.vmem %s27_s14, 2048  ;;  %p802_p4 = scmp.lt.s32.totalorder %s27_s14, %s27_s14 }
   0x9   :  { %p798_p3 = scmp.ne.s32.totalorder %s27_s14, %s797_s22  ;;  %p803_p5 = scmp.lt.s32.totalorder %s797_s22, %s797_s22 }
   0xb   :  { %p804_p6 = por %p803_p5, %p802_p4 }
   0xd   :  { %p805_p7 = pnand %p804_p6, %p798_p3 }
   0xf   :  { %808 = shalt.err (!%p805_p7)
}
  0x10   :  { %s836_s23 = smov 64   ;;  %s837_s24 = smov 4  }
  0x11   :  { %32 = dma.hbm_to_vmem [thread:$0]  %s995_s2, 2048, %s27_s14, [#allocation3], %s836_s23, %s836_s23, %s837_s24  }
  0x12   :  { %s838_s27 = smov [#allocation4]   ;;  %s809_s11 = scalar_lea.hbm %s1001_s8, 1024 }
  0x13   :  { %s48_s28 = sshll.u32 %s838_s27, 4  ;;  %p810_p8 = scmp.ne.s32.totalorder %s1001_s8, %s809_s11  ;;  %s49_s28 = int_to_ptr.vmem [resolvable:$true] %s48_s28 }
  0x14   :  { %p813_p9 = scmp.lt.u32.totalorder %s809_s11, %s1001_s8 }
  0x16   :  { %p815_p10 = pnand %p813_p9, %p810_p8 }
  0x18   :  { %818 = shalt.err (!%p815_p10)
}
  0x19   :  { %s819_s17 = scalar_lea.vmem %s49_s28, 1024  ;;  %p824_p12 = scmp.lt.s32.totalorder %s49_s28, %s49_s28 }
  0x1a   :  { %p820_p11 = scmp.ne.s32.totalorder %s49_s28, %s819_s17  ;;  %p825_p13 = scmp.lt.s32.totalorder %s819_s17, %s819_s17 }
  0x1c   :  { %p826_p0 = por %p825_p13, %p824_p12 }
  0x1e   :  { %p827_p1 = pnand %p826_p0, %p820_p11 }
  0x20   :  { %830 = shalt.err (!%p827_p1)
}
  0x21   :  { %54 = dma.hbm_to_vmem [thread:$0]  %s1001_s8, 1024, %s49_s28, [#allocation5], %s836_s23, %s836_s23, %s837_s24  }
  0x22   :  { %831 = dma.done.wait [#allocation3], 2048  }
  0x23   :  { %832 = vsyncadd [#allocation3], 4294965248 }
  0x24   :  { %833 = dma.done.wait [#allocation5], 1024  }
  0x25   :  { %834 = vsyncadd [#allocation5], 4294966272  ;;  %vm83_vm0 = vcmask 1041408   ;;  %v68_v0 = vld [vmem:[%s996_s3] sm:$0x3]  ;;  %vm76_vm1 = vcmask 15360   ;;  %v162_v28 = vlaneseq }
  0x26   :  { %v64_v1 = vld [vmem:[%s994_s1] sm:$0xff]  ;;  %v65_v2 = vld [vmem:[%s994_s1 + $0x8] sm:$0xff]  ;;  %699 = vmatprep.subr.msk.mxu0 %vm83_vm0, %v68_v0  ;;  %v759_v9 = vld [vmem:[#allocation2 + $0x50] sm:$0xff]   ;;  %v839_v22 = vmov 0.0   ;;  %vm175_vm2 = vcmask 31744   ;;  %vm841_vm7 = vmmov 0  }
  0x27   :  { %v66_v3 = vcvt.s32.f32 %v64_v1  ;;  %v67_v4 = vcvt.s32.f32 %v65_v2  ;;  %v755_v5 = vld [vmem:[#allocation2 + $0x40] sm:$0xff]   ;;  %700 = vmatpush3.msk.msra.mxu0 %vm83_vm0, %v68_v0  ;;  %v757_v7 = vld [vmem:[#allocation2 + $0x48] sm:$0xff]   ;;  %v760_v10 = vld [vmem:[#allocation2 + $0x10] sm:$0xff]   ;;  %v163_v34 = vand.u32 127, %v162_v28  ;;  %v840_v41 = vmov 1.0|1.0  }
  0x28   :  { %v756_v6 = vld [vmem:[#allocation2] sm:$0xff]   ;;  %659 = vmatprep.subr.bf16.mxu1 %v755_v5  ;;  %v758_v8 = vld [vmem:[#allocation2 + $0x8] sm:$0xff]   ;;  %v761_v11 = vld [vmem:[#allocation2 + $0x58] sm:$0xff]   ;;  %704 = vmatprep.subr.bf16.mxu0 %v839_v22 }
  0x29   :  { %701 = vmatprep.mubr.msk.f32.mxu0 %vm76_vm1, %v66_v3  ;;  %660 = vmatpush3.bf16.msra.mxu1 %v756_v6  ;;  %v762_v12 = vld [vmem:[#allocation2 + $0x18] sm:$0xff]   ;;  %v763_v13 = vld [vmem:[#allocation2 + $0x60] sm:$0xff]   ;;  %v765_v15 = vld [vmem:[#allocation2 + $0x68] sm:$0xff]  }
  0x2a   :  { %702 = vmatmul.mubr.msk.f32.vlgmr.msra.gmra.mrb[0].mxu0 %vm76_vm1, %v67_v4  ;;  %661 = vmatprep.subr.bf16.mxu1 %v757_v7  ;;  %v764_v14 = vld [vmem:[#allocation2 + $0x20] sm:$0xff]   ;;  %v766_v16 = vld [vmem:[#allocation2 + $0x28] sm:$0xff]   ;;  %v767_v17 = vld [vmem:[#allocation2 + $0x70] sm:$0xff]  }
  0x2b   :  { %v768_v18 = vld [vmem:[#allocation2 + $0x30] sm:$0xff]   ;;  %v769_v19 = vld [vmem:[#allocation2 + $0x78] sm:$0xff]   ;;  %v771_v21 = vld [vmem:[%s999_s6] sm:$0xff]   ;;  %720 = vmatprep.mubr.msk.bf16.mxu0 %vm841_vm7, %v839_v22 }
  0x2c   :  { %v770_v20 = vld [vmem:[#allocation2 + $0x38] sm:$0xff]   ;;  %705 = vmatpush3.bf16.msra.mxu0 %v771_v21  ;;  %v772_v23 = vld [vmem:[%s999_s6 + $0x8] sm:$0xff]   ;;  %v773_v24 = vld [vmem:[%s999_s6 + $0x10] sm:$0xff]  }
  0x2d   :  { %662 = vmatpush3.bf16.msra.mxu1 %v758_v8  ;;  %706 = vmatprep.subr.bf16.mxu0 %v839_v22  ;;  %v774_v25 = vld [vmem:[%s999_s6 + $0x18] sm:$0xff]   ;;  %v775_v26 = vld [vmem:[%s999_s6 + $0x20] sm:$0xff]   ;;  %v174_v37 = vld [vmem:[%s993_s0 + $0x8] sm:$0xff] }
  0x2e   :  { %663 = vmatprep.subr.bf16.mxu1 %v759_v9  ;;  %v601_v27 = vld [vmem:[%s997_s4] ss:$0 sm:$0xff]  ;;  %vm626_vm5 = vmpackc.low %vm175_vm2, %vm175_vm2  ;;  %v776_v42 = vld [vmem:[%s999_s6 + $0x28] sm:$0xff]  }
  0x2f   :  { %v173_v36 = vld [vmem:[%s993_s0] sm:$0xff]  ;;  %v777_v43 = vld [vmem:[%s999_s6 + $0x30] sm:$0xff]   ;;  %v778_v44 = vld [vmem:[%s999_s6 + $0x38] sm:$0xff]  }
  0x30   :  { %707 = vmatpush3.bf16.msra.mxu0 %v772_v23  ;;  %v627_v40 = vpack.c.bf16 %v174_v37, %v173_v36  ;;  %v779_v45 = vld [vmem:[#allocation4] sm:$0xff]   ;;  %v780_v46 = vld [vmem:[#allocation4 + $0x8] sm:$0xff]   ;;  %v781_v47 = vld [vmem:[#allocation4 + $0x10] sm:$0xff]  }
  0x31   :  { %664 = vmatpush3.bf16.msra.mxu1 %v760_v10  ;;  %708 = vmatprep.subr.bf16.mxu0 %v839_v22  ;;  %v782_v48 = vld [vmem:[#allocation4 + $0x18] sm:$0xff]   ;;  %v783_v49 = vld [vmem:[#allocation4 + $0x20] sm:$0xff]   ;;  %v784_v50 = vld [vmem:[#allocation4 + $0x28] sm:$0xff]  }
  0x32   :  { %665 = vmatprep.subr.bf16.mxu1 %v761_v11  ;;  %v607_v52 = vld [vmem:[%s998_s5] ss:$0 sm:$0xff]  ;;  %v785_v63 = vld [vmem:[#allocation4 + $0x30] sm:$0xff]   ;;  %v786_v0 = vld [vmem:[#allocation4 + $0x38] sm:$0xff]  }
  0x33   :  { %v629_v1 = vld [vmem:[%s1000_s7] ss:$0 sm:$0xff] }
  0x34   :  { %709 = vmatpush3.bf16.msra.mxu0 %v773_v24  ;;  %v638_v11 = vld [vmem:[%s1002_s9] ss:$0 sm:$0xff] }
  0x35   :  { %666 = vmatpush3.bf16.msra.mxu1 %v762_v12  ;;  %710 = vmatprep.subr.bf16.mxu0 %v839_v22 }
  0x36   :  { %667 = vmatprep.subr.bf16.mxu1 %v763_v13 }
  0x38   :  { %711 = vmatpush3.bf16.msra.mxu0 %v774_v25 }
  0x39   :  { %668 = vmatpush3.bf16.msra.mxu1 %v764_v14  ;;  %712 = vmatprep.subr.bf16.mxu0 %v839_v22 }
  0x3a   :  { %669 = vmatprep.subr.bf16.mxu1 %v765_v15 }
  0x3c   :  { %713 = vmatpush3.bf16.msra.mxu0 %v775_v26 }
  0x3d   :  { %670 = vmatpush3.bf16.msra.mxu1 %v766_v16  ;;  %714 = vmatprep.subr.bf16.mxu0 %v839_v22 }
  0x3e   :  { %671 = vmatprep.subr.bf16.mxu1 %v767_v17 }
  0x40   :  { %715 = vmatpush3.bf16.msra.mxu0 %v776_v42 }
  0x41   :  { %672 = vmatpush3.bf16.msra.mxu1 %v768_v18  ;;  %716 = vmatprep.subr.bf16.mxu0 %v839_v22 }
  0x42   :  { %673 = vmatprep.subr.bf16.mxu1 %v769_v19 }
  0x44   :  { %717 = vmatpush3.bf16.msra.mxu0 %v777_v43 }
  0x45   :  { %674 = vmatpush3.bf16.msra.mxu1 %v770_v20  ;;  %718 = vmatprep.subr.bf16.mxu0 %v839_v22 }
  0x46   :  { %724 = vmatprep.subr.bf16.mxu1 %v839_v22 }
  0x48   :  { %719 = vmatpush3.bf16.msra.mxu0 %v778_v44 }
  0xfd   :  { %v703_v29 = vpop.f32.mrb[0].mxu0 }
  0xfe   :  { %v159_v30 = vadd.f32 %v703_v29, %v601_v27  ;;  %v153_v31 = vpop.f32.mrb[1].mxu0 }
  0xff   :  { %v154_v32 = vadd.f32 %v601_v27, %v153_v31 }
 0x100   :  { %v746_v33 = vtrunc.f32 %v159_v30 }
 0x101   :  { %v744_v35 = vtrunc.f32 %v154_v32 }
 0x102   :  { %v747_v38 = vcvt.f32.s32 %v746_v33 }
 0x103   :  { %v745_v39 = vcvt.f32.s32 %v744_v35 }
 0x104   :  { %vm167_vm3 = vcmp.eq.s32.totalorder %v163_v34, %v747_v38 }
 0x105   :  { %vm166_vm4 = vcmp.eq.s32.totalorder %v163_v34, %v745_v39 }
 0x106   :  { %vm624_vm6 = vmpackc.low %vm167_vm3, %vm166_vm4 }
 0x107   :  { %625 = vmatprep.mubr.msk.bf16.mxu1 %vm624_vm6, %v840_v41 }
 0x108   :  { %628 = vmatmul.mubr.msk.bf16.vlgmr.msra.gmra.mrb[0].mxu1 %vm626_vm5, %v627_v40 }
 0x109   :  { %740 = vmatprep.mubr.msk.bf16.mxu1 %vm841_vm7, %v839_v22  ;;  %725 = vmatpush3.bf16.msra.mxu1 %v779_v45 }
 0x10a   :  { %726 = vmatprep.subr.bf16.mxu1 %v839_v22 }
 0x10d   :  { %727 = vmatpush3.bf16.msra.mxu1 %v780_v46 }
 0x10e   :  { %728 = vmatprep.subr.bf16.mxu1 %v839_v22 }
 0x111   :  { %729 = vmatpush3.bf16.msra.mxu1 %v781_v47 }
 0x112   :  { %730 = vmatprep.subr.bf16.mxu1 %v839_v22 }
 0x115   :  { %731 = vmatpush3.bf16.msra.mxu1 %v782_v48 }
 0x116   :  { %732 = vmatprep.subr.bf16.mxu1 %v839_v22 }
 0x119   :  { %733 = vmatpush3.bf16.msra.mxu1 %v783_v49 }
 0x11a   :  { %734 = vmatprep.subr.bf16.mxu1 %v839_v22 }
 0x11d   :  { %735 = vmatpush3.bf16.msra.mxu1 %v784_v50 }
 0x11e   :  { %736 = vmatprep.subr.bf16.mxu1 %v839_v22 }
 0x121   :  { %737 = vmatpush3.bf16.msra.mxu1 %v785_v63 }
 0x122   :  { %738 = vmatprep.subr.bf16.mxu1 %v839_v22 }
 0x125   :  { %739 = vmatpush3.bf16.msra.mxu1 %v786_v0 }
 0x1db   :  { %v675_v51 = vpop.f32.mrb[0].mxu1 }
 0x1dc   :  { %v676_v53 = vpop.f32.mrb[1].mxu1 }
 0x1dd   :  { %v677_v54 = vadd.f32 %v676_v53, %v675_v51  ;;  %v678_v55 = vpop.f32.mrb[2].mxu1 }
 0x1de   :  { %v679_v56 = vpop.f32.mrb[3].mxu1 }
 0x1df   :  { %v349_v57 = vadd.f32 %v677_v54, %v607_v52  ;;  %v680_v58 = vadd.f32 %v679_v56, %v678_v55 }
 0x1e1   :  { %v352_v59 = vadd.f32 %v680_v58, %v607_v52  ;;  %v355_v60 = vmax.f32 %v349_v57, 0.0 }
 0x1e3   :  { %v356_v61 = vmax.f32 %v352_v59, 0.0 }
 0x1e5   :  { %v357_v62 = vpack.c.bf16 %v356_v61, %v355_v60 }
 0x1e7   :  { %721 = vmatmul.mubr.bf16.vlgmr.msra.gmra.mrb[4].mxu0 %v357_v62 }
 0x2ba   :  { %v463_v2 = vpop.f32.mrb[4].mxu0 }
 0x2bb   :  { %v464_v3 = vadd.f32 %v629_v1, %v463_v2  ;;  %v722_v4 = vpop.f32.mrb[5].mxu0 }
 0x2bc   :  { %v466_v5 = vpop.f32.mrb[6].mxu0 }
 0x2bd   :  { %v467_v6 = vadd.f32 %v629_v1, %v466_v5  ;;  %v723_v7 = vpop.f32.mrb[7].mxu0  ;;  %v470_v8 = vmax.f32 %v464_v3, 0.0 }
 0x2bf   :  { %v471_v9 = vmax.f32 %v467_v6, 0.0 }
 0x2c1   :  { %v472_v10 = vpack.c.bf16 %v471_v9, %v470_v8 }
 0x2c3   :  { %741 = vmatmul.mubr.bf16.vlgmr.msra.gmra.mrb[4].mxu1 %v472_v10 }
 0x396   :  { %v578_v12 = vpop.f32.mrb[4].mxu1 }
 0x397   :  { %v742_v13 = vpop.f32.mrb[5].mxu1  ;;  %v579_v15 = vadd.f32 %v638_v11, %v578_v12 }
 0x398   :  { %v581_v14 = vpop.f32.mrb[6].mxu1 }
 0x399   :  { %v582_v16 = vadd.f32 %v638_v11, %v581_v14  ;;  %v743_v17 = vpop.f32.mrb[7].mxu1 }
 0x39b   :  { %v654_v18 = vpack.c.bf16 %v582_v16, %v579_v15 }
 0x39d   :  { %655 = vst [vmem:[%s1003_s10] sm:$0xff] %v654_v18  }
 0x39e   :  { %599 = vsyncpa [#allocation3], 1 }
 0x39f   :  { %600 = vsyncpa [#allocation5], 1 }

</bundles_post_ra>
